<compile_context>
chip_gen: v6e
topology: v6e:2x2x1
jax: 0.10.0
libtpu: 0.0.40
codegen_flags: <defaults>
</compile_context>

<pallas_src>
from functools import lru_cache

import jax
import jax.numpy as jnp
from jax.experimental import pallas as pl
from jax.experimental.pallas import tpu as pltpu


def _round_up(x, m):
    return ((x + m - 1) // m) * m


def _triplet_embed_kernel(a_ref, p_ref, n_ref, w1_ref, b1_ref, w2_ref, b2_ref,
                          ao_ref, po_ref, no_ref):
    # a/p/n_ref:  [tm, K]  (original input dtype, e.g. f32)
    # w1_ref:     [K, HID]   bf16      b1_ref: [1, HID]      f32
    # w2_ref:     [HID, EMBp] bf16     b2_ref: [1, EMBp]     f32
    # outputs:    [tm, EMBp] bf16  (lane-dense, EMB padded to 128)
    w1 = w1_ref[...]
    b1 = b1_ref[...]
    w2 = w2_ref[...]
    b2 = b2_ref[...]

    def embed(x_ref, o_ref):
        x = x_ref[...].astype(w1.dtype)                 # per-tile cast on VPU
        h = jnp.dot(x, w1, preferred_element_type=jnp.float32) + b1
        h = jnp.maximum(h, 0.0)                         # ReLU
        o = jnp.dot(h.astype(w2.dtype), w2,
                    preferred_element_type=jnp.float32) + b2
        o_ref[...] = o.astype(o_ref.dtype)

    embed(a_ref, ao_ref)
    embed(p_ref, po_ref)
    embed(n_ref, no_ref)


@lru_cache(maxsize=None)
def _make_triplet_call(b_pad, k, hid, emb_pad, tm, in_dtype_name):
    in_bytes = jnp.dtype(in_dtype_name).itemsize
    grid = (b_pad // tm,)

    x_spec = pl.BlockSpec((tm, k), lambda i: (i, 0))
    out_spec = pl.BlockSpec((tm, emb_pad), lambda i: (i, 0))
    w1_spec = pl.BlockSpec((k, hid), lambda i: (0, 0))        # resident
    b1_spec = pl.BlockSpec((1, hid), lambda i: (0, 0))        # resident
    w2_spec = pl.BlockSpec((hid, emb_pad), lambda i: (0, 0))  # resident
    b2_spec = pl.BlockSpec((1, emb_pad), lambda i: (0, 0))    # resident

    flops = 3 * 2 * b_pad * (k * hid + hid * emb_pad)
    bytes_accessed = (3 * b_pad * k * in_bytes                 # x streams
                      + (k * hid + hid * emb_pad) * 2          # bf16 weights
                      + (hid + emb_pad) * 4                    # biases
                      + 3 * b_pad * emb_pad * 2)               # bf16 writeback

    # VMEM estimate: double-buffered x tiles dominate; weights are resident.
    vmem_need = (3 * 2 * tm * k * in_bytes
                 + 2 * (k * hid + hid * emb_pad) * 2
                 + 2 * (hid + emb_pad) * 4
                 + 3 * 2 * tm * emb_pad * 2)
    vmem_limit = int(min(max(vmem_need * 3 // 2, 16 << 20), 48 << 20))

    return pl.pallas_call(
        _triplet_embed_kernel,
        out_shape=tuple(jax.ShapeDtypeStruct((b_pad, emb_pad), jnp.bfloat16)
                        for _ in range(3)),
        grid_spec=pltpu.PrefetchScalarGridSpec(
            num_scalar_prefetch=0,
            grid=grid,
            in_specs=[x_spec, x_spec, x_spec,
                      w1_spec, b1_spec, w2_spec, b2_spec],
            out_specs=[out_spec, out_spec, out_spec],
        ),
        compiler_params=pltpu.CompilerParams(
            dimension_semantics=("parallel",),
            vmem_limit_bytes=vmem_limit,
        ),
        cost_estimate=pl.CostEstimate(flops=flops, transcendentals=0,
                                      bytes_accessed=bytes_accessed),
    )


class BaseEmbeddingModelPallas:
    """JAX/Pallas equivalent of BaseEmbeddingModel.forward (triplet embedding)."""

    def __init__(self, in_shape, hidden=128, emb_dim=32, seed=0,
                 param_dtype=jnp.bfloat16):
        C, H, W = in_shape
        self.D_in = C * H * W
        self.HID = hidden
        self.EMB = emb_dim
        self.EMB_pad = _round_up(emb_dim, 128)
        self.param_dtype = param_dtype

        # TODO(synk): re-introduce a K-tiled reduction axis (VMEM accumulator +
        # pl.when init/epilogue) when D_in*HID*2B no longer fits comfortably in
        # VMEM (D_in well beyond ~32K); for this MLP the weights are tiny.

        # Deterministic synthetic parameter init (no checkpoint loading).
        key = jax.random.PRNGKey(seed)
        k1, k2, k3, k4 = jax.random.split(key, 4)
        s1 = 1.0 / jnp.sqrt(self.D_in)
        s2 = 1.0 / jnp.sqrt(self.HID)
        w1 = jax.random.normal(k1, (self.D_in, self.HID), jnp.float32) * s1
        b1 = jax.random.normal(k2, (1, self.HID), jnp.float32) * s1
        w2 = jax.random.normal(k3, (self.HID, self.EMB), jnp.float32) * s2
        b2 = jax.random.normal(k4, (1, self.EMB), jnp.float32) * s2

        # f32 masters kept for reference checks.
        self.w1_f32, self.b1_f32, self.w2_f32, self.b2_f32 = w1, b1, w2, b2

        # bf16 weights (halved HBM traffic on the weight stream); EMB padded to
        # a lane-dense 128 so output stores are unmasked.
        self.w1 = w1.astype(param_dtype)
        self.b1 = b1                                          # f32, tiny
        self.w2 = jnp.pad(w2.astype(param_dtype),
                          ((0, 0), (0, self.EMB_pad - self.EMB)))
        self.b2 = jnp.pad(b2, ((0, 0), (0, self.EMB_pad - self.EMB)))

        self._forward_jit = jax.jit(self._forward_impl)

    def _tile_rows(self, B, in_itemsize):
        m8 = _round_up(max(B, 1), 8)
        if m8 <= 256:
            tm = m8                      # single small tile for tiny batches
        else:
            # >= 2 M tiles so the 'parallel' axis can shard over dual TCs.
            tm = min(512, _round_up((m8 + 1) // 2, 128))
        # Keep the 3 double-buffered x tiles under ~24 MiB of VMEM.
        cap = ((24 << 20) // (3 * 2 * self.D_in * in_itemsize)) // 8 * 8
        return max(8, min(tm, max(cap, 8)))

    def _forward_impl(self, anchor, positive, negative):
        B = anchor.shape[0]
        in_dtype = jnp.dtype(anchor.dtype)
        tm = self._tile_rows(B, in_dtype.itemsize)
        B_pad = _round_up(B, tm)

        def prep(x):
            x = x.reshape(B, -1)          # flatten NCHW (layout no-op)
            if B_pad != B:                # cheap: pads < tm rows, no dtype cast
                x = jnp.pad(x, ((0, B_pad - B), (0, 0)))
            return x

        fn = _make_triplet_call(B_pad, self.D_in, self.HID, self.EMB_pad, tm,
                                in_dtype.name)
        ao, po, no = fn(prep(anchor), prep(positive), prep(negative),
                        self.w1, self.b1, self.w2, self.b2)

        def post(o):                      # drop M/EMB padding, return f32
            return o[:B, : self.EMB].astype(jnp.float32)

        return post(ao), post(po), post(no)

    def forward(self, anchor, positive, negative):
        return self._forward_jit(anchor, positive, negative)


if __name__ == "__main__":
    B, C, H, W = 2, 4, 16, 16
    key = jax.random.PRNGKey(0)
    ka, kp, kn = jax.random.split(key, 3)
    anchor = jax.random.normal(ka, (B, C, H, W), jnp.float32)
    positive = jax.random.normal(kp, (B, C, H, W), jnp.float32)
    negative = jax.random.normal(kn, (B, C, H, W), jnp.float32)

    model = BaseEmbeddingModelPallas(in_shape=(C, H, W), hidden=128,
                                     emb_dim=32, seed=0)
    a_out, p_out, n_out = model.forward(anchor, positive, negative)
    jax.block_until_ready((a_out, p_out, n_out))

    # Plain-JAX reference mirroring the kernel numerics (bf16 weights/acts,
    # f32 accumulation, bf16 output rounding).
    def ref_embed(x):
        xf = x.reshape(x.shape[0], -1).astype(jnp.bfloat16)
        w1 = model.w1_f32.astype(jnp.bfloat16)
        w2 = model.w2_f32.astype(jnp.bfloat16)
        h = jnp.dot(xf, w1, preferred_element_type=jnp.float32) + model.b1_f32
        h = jnp.maximum(h, 0.0)
        o = jnp.dot(h.astype(jnp.bfloat16), w2,
                    preferred_element_type=jnp.float32) + model.b2_f32
        return o.astype(jnp.bfloat16).astype(jnp.float32)

    assert a_out.shape == (B, 32) and p_out.shape == (B, 32) and n_out.shape == (B, 32)
    for out, x in ((a_out, anchor), (p_out, positive), (n_out, negative)):
        ref = ref_embed(x)
        assert jnp.allclose(out, ref, atol=2e-2, rtol=2e-2), \
            float(jnp.max(jnp.abs(out - ref)))

    print("KERNEL_OK")
</pallas_src>

<mosaic_0001>
module attributes {stable_mosaic.version = 11 : i64} {
  func.func @_triplet_embed_kernel(%arg0: i32, %arg1: memref<8x1024xf32, #tpu.memory_space<vmem>>, %arg2: memref<8x1024xf32, #tpu.memory_space<vmem>>, %arg3: memref<8x1024xf32, #tpu.memory_space<vmem>>, %arg4: memref<1024x128xbf16, #tpu.memory_space<vmem>>, %arg5: memref<1x128xf32, #tpu.memory_space<vmem>>, %arg6: memref<128x128xbf16, #tpu.memory_space<vmem>>, %arg7: memref<1x128xf32, #tpu.memory_space<vmem>>, %arg8: memref<8x128xbf16, #tpu.memory_space<vmem>>, %arg9: memref<8x128xbf16, #tpu.memory_space<vmem>>, %arg10: memref<8x128xbf16, #tpu.memory_space<vmem>>) attributes {dimension_semantics = [#tpu.dimension_semantics<parallel>], iteration_bounds = array<i64: 1>, scalar_prefetch = 0 : i64, scratch_operands = 0 : i64, tpu.core_type = #tpu.core_type<tc>, window_params = [{transform_indices = @transform_0, window_bounds = array<i64: 8, 1024>}, {transform_indices = @transform_1, window_bounds = array<i64: 8, 1024>}, {transform_indices = @transform_2, window_bounds = array<i64: 8, 1024>}, {pipeline_mode = #tpu.pipeline_mode<synchronous>, transform_indices = @transform_3, window_bounds = array<i64: 1024, 128>}, {pipeline_mode = #tpu.pipeline_mode<synchronous>, transform_indices = @transform_4, window_bounds = array<i64: 1, 128>}, {pipeline_mode = #tpu.pipeline_mode<synchronous>, transform_indices = @transform_5, window_bounds = array<i64: 128, 128>}, {pipeline_mode = #tpu.pipeline_mode<synchronous>, transform_indices = @transform_6, window_bounds = array<i64: 1, 128>}, {transform_indices = @transform_7, window_bounds = array<i64: 8, 128>}, {transform_indices = @transform_8, window_bounds = array<i64: 8, 128>}, {transform_indices = @transform_9, window_bounds = array<i64: 8, 128>}]} {
    %c0 = arith.constant 0 : index
    %c0_0 = arith.constant 0 : index
    %0 = vector.load %arg4[%c0, %c0_0] : memref<1024x128xbf16, #tpu.memory_space<vmem>>, vector<1024x128xbf16>
    %c0_1 = arith.constant 0 : index
    %c0_2 = arith.constant 0 : index
    %1 = vector.load %arg5[%c0_1, %c0_2] : memref<1x128xf32, #tpu.memory_space<vmem>>, vector<1x128xf32>
    %c0_3 = arith.constant 0 : index
    %c0_4 = arith.constant 0 : index
    %2 = vector.load %arg6[%c0_3, %c0_4] : memref<128x128xbf16, #tpu.memory_space<vmem>>, vector<128x128xbf16>
    %c0_5 = arith.constant 0 : index
    %c0_6 = arith.constant 0 : index
    %3 = vector.load %arg7[%c0_5, %c0_6] : memref<1x128xf32, #tpu.memory_space<vmem>>, vector<1x128xf32>
    %c0_7 = arith.constant 0 : index
    %c0_8 = arith.constant 0 : index
    %4 = vector.load %arg1[%c0_7, %c0_8] : memref<8x1024xf32, #tpu.memory_space<vmem>>, vector<8x1024xf32>
    %5 = arith.truncf %4 : vector<8x1024xf32> to vector<8x1024xbf16>
    %cst = arith.constant dense<0.000000e+00> : vector<8x128xf32>
    %6 = tpu.matmul %5, %0, %cst {dimension_numbers = #tpu.dot_dimension_numbers<[1], [0], [0], [1], [0, 0, 1, 1], [], []>} : vector<8x1024xbf16>, vector<1024x128xbf16>, vector<8x128xf32> -> vector<8x128xf32>
    %7 = vector.broadcast %1 : vector<1x128xf32> to vector<8x128xf32>
    %8 = arith.addf %6, %7 : vector<8x128xf32>
    %cst_9 = arith.constant 0.000000e+00 : f32
    %9 = vector.broadcast %cst_9 : f32 to vector<8x128xf32>
    %10 = arith.maximumf %8, %9 : vector<8x128xf32>
    %11 = arith.truncf %10 : vector<8x128xf32> to vector<8x128xbf16>
    %cst_10 = arith.constant dense<0.000000e+00> : vector<8x128xf32>
    %12 = tpu.matmul %11, %2, %cst_10 {dimension_numbers = #tpu.dot_dimension_numbers<[1], [0], [0], [1], [0, 0, 1, 1], [], []>} : vector<8x128xbf16>, vector<128x128xbf16>, vector<8x128xf32> -> vector<8x128xf32>
    %13 = vector.broadcast %3 : vector<1x128xf32> to vector<8x128xf32>
    %14 = arith.addf %12, %13 : vector<8x128xf32>
    %15 = arith.truncf %14 : vector<8x128xf32> to vector<8x128xbf16>
    %c0_11 = arith.constant 0 : index
    %c0_12 = arith.constant 0 : index
    %16 = vector.load %arg8[%c0_11, %c0_12] : memref<8x128xbf16, #tpu.memory_space<vmem>>, vector<8x128xbf16>
    tpu.vector_store %arg8[%c0_11, %c0_12], %15 {strides = array<i32>} : memref<8x128xbf16, #tpu.memory_space<vmem>>, vector<8x128xbf16>,
    %c0_13 = arith.constant 0 : index
    %c0_14 = arith.constant 0 : index
    %17 = vector.load %arg2[%c0_13, %c0_14] : memref<8x1024xf32, #tpu.memory_space<vmem>>, vector<8x1024xf32>
    %18 = arith.truncf %17 : vector<8x1024xf32> to vector<8x1024xbf16>
    %cst_15 = arith.constant dense<0.000000e+00> : vector<8x128xf32>
    %19 = tpu.matmul %18, %0, %cst_15 {dimension_numbers = #tpu.dot_dimension_numbers<[1], [0], [0], [1], [0, 0, 1, 1], [], []>} : vector<8x1024xbf16>, vector<1024x128xbf16>, vector<8x128xf32> -> vector<8x128xf32>
    %20 = vector.broadcast %1 : vector<1x128xf32> to vector<8x128xf32>
    %21 = arith.addf %19, %20 : vector<8x128xf32>
    %cst_16 = arith.constant 0.000000e+00 : f32
    %22 = vector.broadcast %cst_16 : f32 to vector<8x128xf32>
    %23 = arith.maximumf %21, %22 : vector<8x128xf32>
    %24 = arith.truncf %23 : vector<8x128xf32> to vector<8x128xbf16>
    %cst_17 = arith.constant dense<0.000000e+00> : vector<8x128xf32>
    %25 = tpu.matmul %24, %2, %cst_17 {dimension_numbers = #tpu.dot_dimension_numbers<[1], [0], [0], [1], [0, 0, 1, 1], [], []>} : vector<8x128xbf16>, vector<128x128xbf16>, vector<8x128xf32> -> vector<8x128xf32>
    %26 = vector.broadcast %3 : vector<1x128xf32> to vector<8x128xf32>
    %27 = arith.addf %25, %26 : vector<8x128xf32>
    %28 = arith.truncf %27 : vector<8x128xf32> to vector<8x128xbf16>
    %c0_18 = arith.constant 0 : index
    %c0_19 = arith.constant 0 : index
    %29 = vector.load %arg9[%c0_18, %c0_19] : memref<8x128xbf16, #tpu.memory_space<vmem>>, vector<8x128xbf16>
    tpu.vector_store %arg9[%c0_18, %c0_19], %28 {strides = array<i32>} : memref<8x128xbf16, #tpu.memory_space<vmem>>, vector<8x128xbf16>,
    %c0_20 = arith.constant 0 : index
    %c0_21 = arith.constant 0 : index
    %30 = vector.load %arg3[%c0_20, %c0_21] : memref<8x1024xf32, #tpu.memory_space<vmem>>, vector<8x1024xf32>
    %31 = arith.truncf %30 : vector<8x1024xf32> to vector<8x1024xbf16>
    %cst_22 = arith.constant dense<0.000000e+00> : vector<8x128xf32>
    %32 = tpu.matmul %31, %0, %cst_22 {dimension_numbers = #tpu.dot_dimension_numbers<[1], [0], [0], [1], [0, 0, 1, 1], [], []>} : vector<8x1024xbf16>, vector<1024x128xbf16>, vector<8x128xf32> -> vector<8x128xf32>
    %33 = vector.broadcast %1 : vector<1x128xf32> to vector<8x128xf32>
    %34 = arith.addf %32, %33 : vector<8x128xf32>
    %cst_23 = arith.constant 0.000000e+00 : f32
    %35 = vector.broadcast %cst_23 : f32 to vector<8x128xf32>
    %36 = arith.maximumf %34, %35 : vector<8x128xf32>
    %37 = arith.truncf %36 : vector<8x128xf32> to vector<8x128xbf16>
    %cst_24 = arith.constant dense<0.000000e+00> : vector<8x128xf32>
    %38 = tpu.matmul %37, %2, %cst_24 {dimension_numbers = #tpu.dot_dimension_numbers<[1], [0], [0], [1], [0, 0, 1, 1], [], []>} : vector<8x128xbf16>, vector<128x128xbf16>, vector<8x128xf32> -> vector<8x128xf32>
    %39 = vector.broadcast %3 : vector<1x128xf32> to vector<8x128xf32>
    %40 = arith.addf %38, %39 : vector<8x128xf32>
    %41 = arith.truncf %40 : vector<8x128xf32> to vector<8x128xbf16>
    %c0_25 = arith.constant 0 : index
    %c0_26 = arith.constant 0 : index
    %42 = vector.load %arg10[%c0_25, %c0_26] : memref<8x128xbf16, #tpu.memory_space<vmem>>, vector<8x128xbf16>
    tpu.vector_store %arg10[%c0_25, %c0_26], %41 {strides = array<i32>} : memref<8x128xbf16, #tpu.memory_space<vmem>>, vector<8x128xbf16>,
    return
  }
  func.func @transform_0(%arg0: i32) -> (i32, i32) {
    %c0_i32 = arith.constant 0 : i32
    %c0_i32_0 = arith.constant 0 : i32
    return %arg0, %c0_i32 : i32, i32
  }
  func.func @transform_1(%arg0: i32) -> (i32, i32) {
    %c0_i32 = arith.constant 0 : i32
    %c0_i32_0 = arith.constant 0 : i32
    return %arg0, %c0_i32 : i32, i32
  }
  func.func @transform_2(%arg0: i32) -> (i32, i32) {
    %c0_i32 = arith.constant 0 : i32
    %c0_i32_0 = arith.constant 0 : i32
    return %arg0, %c0_i32 : i32, i32
  }
  func.func @transform_3(%arg0: i32) -> (i32, i32) {
    %c0_i32 = arith.constant 0 : i32
    %c0_i32_0 = arith.constant 0 : i32
    %c0_i32_1 = arith.constant 0 : i32
    return %c0_i32, %c0_i32_0 : i32, i32
  }
  func.func @transform_4(%arg0: i32) -> (i32, i32) {
    %c0_i32 = arith.constant 0 : i32
    %c0_i32_0 = arith.constant 0 : i32
    %c0_i32_1 = arith.constant 0 : i32
    return %c0_i32, %c0_i32_0 : i32, i32
  }
  func.func @transform_5(%arg0: i32) -> (i32, i32) {
    %c0_i32 = arith.constant 0 : i32
    %c0_i32_0 = arith.constant 0 : i32
    %c0_i32_1 = arith.constant 0 : i32
    return %c0_i32, %c0_i32_0 : i32, i32
  }
  func.func @transform_6(%arg0: i32) -> (i32, i32) {
    %c0_i32 = arith.constant 0 : i32
    %c0_i32_0 = arith.constant 0 : i32
    %c0_i32_1 = arith.constant 0 : i32
    return %c0_i32, %c0_i32_0 : i32, i32
  }
  func.func @transform_7(%arg0: i32) -> (i32, i32) {
    %c0_i32 = arith.constant 0 : i32
    %c0_i32_0 = arith.constant 0 : i32
    return %arg0, %c0_i32 : i32, i32
  }
  func.func @transform_8(%arg0: i32) -> (i32, i32) {
    %c0_i32 = arith.constant 0 : i32
    %c0_i32_0 = arith.constant 0 : i32
    return %arg0, %c0_i32 : i32, i32
  }
  func.func @transform_9(%arg0: i32) -> (i32, i32) {
    %c0_i32 = arith.constant 0 : i32
    %c0_i32_0 = arith.constant 0 : i32
    return %arg0, %c0_i32 : i32, i32
  }
}

</mosaic_0001>

<bundles_post_ra>
// kernel: _forward_impl.1
= control target key start
LH: loop header
LB: loop body
LE: loop exit
PB: predicated region body
PF: predicated region fallthrough
CT: control target
= control target key end

     0   :  { %vm1798_vm0 = vmmov 0   ;;  %s2570_s3 = inlined_call_operand.vmem [shape: bf16[1024,128], index: 3, kind: input, shape index: {}]   ;;  %s2571_s0 = inlined_call_operand.vmem [shape: f32[8,1024], index: 0, kind: input, shape index: {}]   ;;  %s2572_s5 = inlined_call_operand.vmem [shape: bf16[128,128], index: 5, kind: input, shape index: {}]   ;;  %s2573_s1 = inlined_call_operand.vmem [shape: f32[8,1024], index: 1, kind: input, shape index: {}]   ;;  %s2574_s4 = inlined_call_operand.vmem [shape: f32[1,128], index: 4, kind: input, shape index: {}]   ;;  %s2575_s2 = inlined_call_operand.vmem [shape: f32[8,1024], index: 2, kind: input, shape index: {}]   ;;  %s2576_s6 = inlined_call_operand.vmem [shape: f32[1,128], index: 6, kind: input, shape index: {}]   ;;  %s2577_s7 = inlined_call_operand.vmem [shape: bf16[8,128], index: 7, kind: output, shape index: {0}]   ;;  %s2578_s8 = inlined_call_operand.vmem [shape: bf16[8,128], index: 8, kind: output, shape index: {1}]   ;;  %s2579_s9 = inlined_call_operand.vmem [shape: bf16[8,128], index: 9, kind: output, shape index: {2}]  }
   0x1   :  { %v1852_v0 = vld [vmem:[%s2570_s3 + $0x78] sm:$0xff]   ;;  %v1875_v4 = vld [vmem:[%s2570_s3 + $0x70] sm:$0xff]   ;;  %v1899_v8 = vld [vmem:[%s2570_s3 + $0x68] sm:$0xff]  }
   0x2   :  { %v1857_v1 = vld [vmem:[%s2570_s3 + $0xf8] sm:$0xff]   ;;  %1366 = vmatprep.subr.bf16.mxu0 %v1852_v0  ;;  %v1881_v5 = vld [vmem:[%s2570_s3 + $0xf0] sm:$0xff]   ;;  %v1905_v9 = vld [vmem:[%s2570_s3 + $0xe8] sm:$0xff]  }
   0x3   :  { %v1863_v2 = vld [vmem:[%s2570_s3 + $0x38] sm:$0xff]   ;;  %1388 = vmatprep.subr.bf16.mxu1 %v1857_v1  ;;  %v1887_v6 = vld [vmem:[%s2570_s3 + $0x30] sm:$0xff]   ;;  %v1911_v10 = vld [vmem:[%s2570_s3 + $0x28] sm:$0xff]  }
   0x4   :  { %v1869_v3 = vld [vmem:[%s2570_s3 + $0xb8] sm:$0xff]   ;;  %1367 = vmatpush3.bf16.msra.mxu0 %v1863_v2  ;;  %v1893_v7 = vld [vmem:[%s2570_s3 + $0xb0] sm:$0xff]   ;;  %v1917_v11 = vld [vmem:[%s2570_s3 + $0xa8] sm:$0xff]  }
   0x5   :  { %1389 = vmatpush3.bf16.msra.mxu1 %v1869_v3  ;;  %1368 = vmatprep.subr.bf16.mxu0 %v1875_v4  ;;  %v1923_v12 = vld [vmem:[%s2570_s3 + $0x60] sm:$0xff]   ;;  %v1947_v16 = vld [vmem:[%s2570_s3 + $0x58] sm:$0xff]   ;;  %v1971_v20 = vld [vmem:[%s2570_s3 + $0x50] sm:$0xff]  }
   0x6   :  { %1390 = vmatprep.subr.bf16.mxu1 %v1881_v5  ;;  %v1929_v13 = vld [vmem:[%s2570_s3 + $0xe0] sm:$0xff]   ;;  %v1953_v17 = vld [vmem:[%s2570_s3 + $0xd8] sm:$0xff]   ;;  %v1977_v21 = vld [vmem:[%s2570_s3 + $0xd0] sm:$0xff]  }
   0x7   :  { %v1935_v14 = vld [vmem:[%s2570_s3 + $0x20] sm:$0xff]   ;;  %v1959_v18 = vld [vmem:[%s2570_s3 + $0x18] sm:$0xff]   ;;  %v1983_v22 = vld [vmem:[%s2570_s3 + $0x10] sm:$0xff]  }
   0x8   :  { %1369 = vmatpush3.bf16.msra.mxu0 %v1887_v6  ;;  %v1941_v15 = vld [vmem:[%s2570_s3 + $0xa0] sm:$0xff]   ;;  %v1965_v19 = vld [vmem:[%s2570_s3 + $0x98] sm:$0xff]   ;;  %v1989_v23 = vld [vmem:[%s2570_s3 + $0x90] sm:$0xff]  }
   0x9   :  { %1391 = vmatpush3.bf16.msra.mxu1 %v1893_v7  ;;  %1370 = vmatprep.subr.bf16.mxu0 %v1899_v8  ;;  %v1995_v24 = vld [vmem:[%s2570_s3 + $0x48] sm:$0xff]   ;;  %v2019_v28 = vld [vmem:[%s2570_s3 + $0x40] sm:$0xff]   ;;  %v179_v33 = vld [vmem:[%s2571_s0 + $0x18] sm:$0xff] }
   0xa   :  { %1392 = vmatprep.subr.bf16.mxu1 %v1905_v9  ;;  %2618 = vst [vmem:[#allocation2_spill] sm:$0xff] %v1995_v24  ;;  %v2001_v25 = vld [vmem:[%s2570_s3 + $0xc8] sm:$0xff]   ;;  %2620 = vst [vmem:[#allocation4_spill] sm:$0xff] %v2019_v28  ;;  %v2025_v29 = vld [vmem:[%s2570_s3 + $0xc0] sm:$0xff]   ;;  %v187_v36 = vpack.c.bf16 %v179_v33, %v179_v33 }
   0xb   :  { %v2007_v26 = vld [vmem:[%s2570_s3 + $0x8] sm:$0xff]   ;;  %v2031_v30 = vld [vmem:[%s2570_s3] sm:$0xff]   ;;  %v178_v38 = vld [vmem:[%s2571_s0 + $0x10] sm:$0xff] }
   0xc   :  { %1371 = vmatpush3.bf16.msra.mxu0 %v1911_v10  ;;  %2619 = vst [vmem:[#allocation3_spill] sm:$0xff] %v2007_v26  ;;  %v2013_v27 = vld [vmem:[%s2570_s3 + $0x88] sm:$0xff]   ;;  %2621 = vst [vmem:[#allocation5_spill] sm:$0xff] %v2031_v30  ;;  %v2037_v31 = vld [vmem:[%s2570_s3 + $0x80] sm:$0xff]   ;;  %v186_v39 = vpack.c.bf16 %v178_v38, %v178_v38  ;;  %654 = vmatprep.mubr.bf16.mxu1 %v187_v36 }
   0xd   :  { %1393 = vmatpush3.bf16.msra.mxu1 %v1917_v11  ;;  %1372 = vmatprep.subr.bf16.mxu0 %v1923_v12  ;;  %v177_v32 = vld [vmem:[%s2571_s0 + $0x8] sm:$0xff]  ;;  %v176_v34 = vld [vmem:[%s2571_s0] sm:$0xff]  ;;  %v2056_v40 = vld [vmem:[%s2570_s3 + $0x178] sm:$0xff]  }
   0xe   :  { %1394 = vmatprep.subr.bf16.mxu1 %v1929_v13  ;;  %v185_v35 = vpack.c.bf16 %v177_v32, %v177_v32  ;;  %v184_v37 = vpack.c.bf16 %v176_v34, %v176_v34  ;;  %2622 = vst [vmem:[#allocation6_spill] sm:$0xff] %v2056_v40  ;;  %v2061_v41 = vld [vmem:[%s2570_s3 + $0x1f8] sm:$0xff]   ;;  %v2079_v44 = vld [vmem:[%s2570_s3 + $0x170] sm:$0xff]   ;;  %v2103_v48 = vld [vmem:[%s2570_s3 + $0x168] sm:$0xff]  }
   0xf   :  { %v2066_v42 = vld [vmem:[%s2570_s3 + $0x138] sm:$0xff]   ;;  %v2085_v45 = vld [vmem:[%s2570_s3 + $0x1f0] sm:$0xff]   ;;  %v2109_v49 = vld [vmem:[%s2570_s3 + $0x1e8] sm:$0xff]  }
  0x10   :  { %1373 = vmatpush3.bf16.msra.mxu0 %v1935_v14  ;;  %614 = vmatprep.mubr.bf16.mxu0 %v185_v35  ;;  %v2073_v43 = vld [vmem:[%s2570_s3 + $0x1b8] sm:$0xff]   ;;  %v2091_v46 = vld [vmem:[%s2570_s3 + $0x130] sm:$0xff]   ;;  %v2115_v50 = vld [vmem:[%s2570_s3 + $0x128] sm:$0xff]  }
  0x11   :  { %1395 = vmatpush3.bf16.msra.mxu1 %v1941_v15  ;;  %1374 = vmatprep.subr.bf16.mxu0 %v1947_v16  ;;  %v2097_v47 = vld [vmem:[%s2570_s3 + $0x1b0] sm:$0xff]   ;;  %v2121_v51 = vld [vmem:[%s2570_s3 + $0x1a8] sm:$0xff]   ;;  %v2127_v52 = vld [vmem:[%s2570_s3 + $0x160] sm:$0xff]  }
  0x12   :  { %1396 = vmatprep.subr.bf16.mxu1 %v1953_v17  ;;  %v2133_v53 = vld [vmem:[%s2570_s3 + $0x1e0] sm:$0xff]   ;;  %v2151_v56 = vld [vmem:[%s2570_s3 + $0x158] sm:$0xff]   ;;  %v2175_v60 = vld [vmem:[%s2570_s3 + $0x150] sm:$0xff]  }
  0x13   :  { %v2139_v54 = vld [vmem:[%s2570_s3 + $0x120] sm:$0xff]   ;;  %v2157_v57 = vld [vmem:[%s2570_s3 + $0x1d8] sm:$0xff]   ;;  %2627 = vst [vmem:[#allocation11_spill] sm:$0xff] %v2175_v60  ;;  %v2181_v61 = vld [vmem:[%s2570_s3 + $0x1d0] sm:$0xff]  }
  0x14   :  { %1375 = vmatpush3.bf16.msra.mxu0 %v1959_v18  ;;  %v2145_v55 = vld [vmem:[%s2570_s3 + $0x1a0] sm:$0xff]   ;;  %2624 = vst [vmem:[#allocation8_spill] sm:$0xff] %v2157_v57  ;;  %v2163_v58 = vld [vmem:[%s2570_s3 + $0x118] sm:$0xff]   ;;  %2628 = vst [vmem:[#allocation12_spill] sm:$0xff] %v2181_v61 }
  0x15   :  { %1397 = vmatpush3.bf16.msra.mxu1 %v1965_v19  ;;  %1376 = vmatprep.subr.bf16.mxu0 %v1971_v20  ;;  %2623 = vst [vmem:[#allocation7_spill] sm:$0xff] %v2145_v55  ;;  %2625 = vst [vmem:[#allocation9_spill] sm:$0xff] %v2163_v58  ;;  %v2169_v59 = vld [vmem:[%s2570_s3 + $0x198] sm:$0xff]   ;;  %v2187_v62 = vld [vmem:[%s2570_s3 + $0x110] sm:$0xff]  }
  0x16   :  { %1398 = vmatprep.subr.bf16.mxu1 %v1977_v21  ;;  %2626 = vst [vmem:[#allocation10_spill] sm:$0xff] %v2169_v59  ;;  %2629 = vst [vmem:[#allocation13_spill] sm:$0xff] %v2187_v62  ;;  %v2193_v63 = vld [vmem:[%s2570_s3 + $0x190] sm:$0xff]   ;;  %v2199_v32 = vld [vmem:[%s2570_s3 + $0x148] sm:$0xff]  }
  0x17   :  { %2630 = vst [vmem:[#allocation14_spill] sm:$0xff] %v2193_v63  ;;  %2631 = vst [vmem:[#allocation15_spill] sm:$0xff] %v2199_v32  ;;  %v2205_v33 = vld [vmem:[%s2570_s3 + $0x1c8] sm:$0xff]   ;;  %v2223_v36 = vld [vmem:[%s2570_s3 + $0x140] sm:$0xff]  }
  0x18   :  { %1377 = vmatpush3.bf16.msra.mxu0 %v1983_v22  ;;  %2632 = vst [vmem:[#allocation16_spill] sm:$0xff] %v2205_v33  ;;  %v2211_v34 = vld [vmem:[%s2570_s3 + $0x108] sm:$0xff]   ;;  %2635 = vst [vmem:[#allocation19_spill] sm:$0xff] %v2223_v36  ;;  %v2235_v38 = vld [vmem:[%s2570_s3 + $0x100] sm:$0xff]  }
  0x19   :  { %1399 = vmatpush3.bf16.msra.mxu1 %v1989_v23  ;;  %1378 = vmatprep.subr.bf16.mxu0 %v1995_v24  ;;  %2633 = vst [vmem:[#allocation17_spill] sm:$0xff] %v2211_v34  ;;  %v2217_v35 = vld [vmem:[%s2570_s3 + $0x188] sm:$0xff]   ;;  %2637 = vst [vmem:[#allocation21_spill] sm:$0xff] %v2235_v38 }
  0x1a   :  { %1400 = vmatprep.subr.bf16.mxu1 %v2001_v25  ;;  %2634 = vst [vmem:[#allocation18_spill] sm:$0xff] %v2217_v35 }
  0x1c   :  { %1379 = vmatpush3.bf16.msra.mxu0 %v2007_v26 }
  0x1d   :  { %1401 = vmatpush3.bf16.msra.mxu1 %v2013_v27  ;;  %1380 = vmatprep.subr.bf16.mxu0 %v2019_v28 }
  0x1e   :  { %1402 = vmatprep.subr.bf16.mxu1 %v2025_v29 }
  0x20   :  { %1381 = vmatpush3.bf16.msra.mxu0 %v2031_v30 }
  0x21   :  { %1403 = vmatpush3.bf16.msra.mxu1 %v2037_v31  ;;  %1410 = vmatprep.subr.bf16.mxu0 %v2056_v40 }
  0x22   :  { %1432 = vmatprep.subr.bf16.mxu1 %v2061_v41 }
  0x23   :  { %615 = vmatmul.mubr.bf16.vlgmr.msra.gmra.mxu0 %v184_v37  ;;  %v2229_v37 = vld [vmem:[%s2570_s3 + $0x1c0] sm:$0xff]  }
  0x24   :  { %655 = vmatmul.mubr.bf16.vlgmr.msra.gmra.mxu1 %v186_v39  ;;  %1411 = vmatpush3.bf16.msra.mxu0 %v2066_v42  ;;  %2636 = vst [vmem:[#allocation20_spill] sm:$0xff] %v2229_v37  ;;  %v2241_v39 = vld [vmem:[%s2570_s3 + $0x180] sm:$0xff]  }
  0x25   :  { %1433 = vmatpush3.bf16.msra.mxu1 %v2073_v43  ;;  %1412 = vmatprep.subr.bf16.mxu0 %v2079_v44 }
  0x26   :  { %1434 = vmatprep.subr.bf16.mxu1 %v2085_v45 }
  0x28   :  { %1413 = vmatpush3.bf16.msra.mxu0 %v2091_v46 }
  0x29   :  { %1435 = vmatpush3.bf16.msra.mxu1 %v2097_v47  ;;  %1414 = vmatprep.subr.bf16.mxu0 %v2103_v48 }
  0x2a   :  { %1436 = vmatprep.subr.bf16.mxu1 %v2109_v49 }
  0x2c   :  { %1415 = vmatpush3.bf16.msra.mxu0 %v2115_v50 }
  0x2d   :  { %1437 = vmatpush3.bf16.msra.mxu1 %v2121_v51  ;;  %1416 = vmatprep.subr.bf16.mxu0 %v2127_v52 }
  0x2e   :  { %1438 = vmatprep.subr.bf16.mxu1 %v2133_v53 }
  0x30   :  { %1417 = vmatpush3.bf16.msra.mxu0 %v2139_v54 }
  0x31   :  { %1439 = vmatpush3.bf16.msra.mxu1 %v2145_v55  ;;  %1418 = vmatprep.subr.bf16.mxu0 %v2151_v56 }
  0x32   :  { %1440 = vmatprep.subr.bf16.mxu1 %v2157_v57 }
  0x34   :  { %1419 = vmatpush3.bf16.msra.mxu0 %v2163_v58 }
  0x35   :  { %1441 = vmatpush3.bf16.msra.mxu1 %v2169_v59  ;;  %1420 = vmatprep.subr.bf16.mxu0 %v2175_v60  ;;  %v182_v59 = vld [vmem:[%s2571_s0 + $0x30] sm:$0xff] }
  0x36   :  { %1442 = vmatprep.subr.bf16.mxu1 %v2181_v61  ;;  %v190_v55 = vpack.c.bf16 %v182_v59, %v182_v59  ;;  %v2284_v59 = vld [vmem:[%s2572_s5 + $0x30] sm:$0xff]  }
  0x37   :  { %2639 = vst [vmem:[#allocation23_spill] sm:$0xff] %v2284_v59 }
  0x38   :  { %1421 = vmatpush3.bf16.msra.mxu0 %v2187_v62 }
  0x39   :  { %1443 = vmatpush3.bf16.msra.mxu1 %v2193_v63  ;;  %1422 = vmatprep.subr.bf16.mxu0 %v2199_v32 }
  0x3a   :  { %1444 = vmatprep.subr.bf16.mxu1 %v2205_v33  ;;  %v183_v33 = vld [vmem:[%s2571_s0 + $0x38] sm:$0xff] }
  0x3b   :  { %v191_v61 = vpack.c.bf16 %v183_v33, %v183_v33  ;;  %v2305_v33 = vld [vmem:[%s2572_s5 + $0x18] sm:$0xff]  }
  0x3c   :  { %1423 = vmatpush3.bf16.msra.mxu0 %v2211_v34  ;;  %2642 = vst [vmem:[#allocation26_spill] sm:$0xff] %v2305_v33 }
  0x3d   :  { %1445 = vmatpush3.bf16.msra.mxu1 %v2217_v35  ;;  %1424 = vmatprep.subr.bf16.mxu0 %v2223_v36  ;;  %v181_v35 = vld [vmem:[%s2571_s0 + $0x28] sm:$0xff] }
  0x3e   :  { %1446 = vmatprep.subr.bf16.mxu1 %v2229_v37  ;;  %v189_v63 = vpack.c.bf16 %v181_v35, %v181_v35  ;;  %v180_v37 = vld [vmem:[%s2571_s0 + $0x20] sm:$0xff]  ;;  %734 = vmatprep.mubr.bf16.mxu1 %v191_v61  ;;  %v2290_v61 = vld [vmem:[%s2572_s5 + $0x28] sm:$0xff]   ;;  %v2313_v35 = vld [vmem:[%s2572_s5 + $0x10] sm:$0xff]  }
  0x3f   :  { %v188_v57 = vpack.c.bf16 %v180_v37, %v180_v37  ;;  %2640 = vst [vmem:[#allocation24_spill] sm:$0xff] %v2290_v61  ;;  %2643 = vst [vmem:[#allocation27_spill] sm:$0xff] %v2313_v35  ;;  %v2320_v37 = vld [vmem:[%s2572_s5 + $0x8] sm:$0xff]  }
  0x40   :  { %1425 = vmatpush3.bf16.msra.mxu0 %v2235_v38  ;;  %694 = vmatprep.mubr.bf16.mxu0 %v189_v63  ;;  %v2298_v63 = vld [vmem:[%s2572_s5 + $0x20] sm:$0xff]   ;;  %2644 = vst [vmem:[#allocation28_spill] sm:$0xff] %v2320_v37 }
  0x41   :  { %1447 = vmatpush3.bf16.msra.mxu1 %v2241_v39  ;;  %2641 = vst [vmem:[#allocation25_spill] sm:$0xff] %v2298_v63 }
  0x42   :  { %1463 = vmatprep.subr.bf16.mxu1 %v1852_v0 }
  0x43   :  { %695 = vmatmul.mubr.bf16.vlgmr.msra.gmra.mxu0 %v188_v57  ;;  %v2278_v57 = vld [vmem:[%s2572_s5 + $0x38] sm:$0xff]  }
  0x44   :  { %735 = vmatmul.mubr.bf16.vlgmr.msra.gmra.mxu1 %v190_v55  ;;  %v2607_v55 = vmov 0.0   ;;  %2638 = vst [vmem:[#allocation22_spill] sm:$0xff] %v2278_v57 }
  0x45   :  { %1464 = vmatpush3.bf16.msra.mxu1 %v1863_v2  ;;  %1657 = vmatprep.subr.bf16.mxu0 %v2607_v55 }
  0x46   :  { %1465 = vmatprep.subr.bf16.mxu1 %v1875_v4  ;;  %1658 = vmatpush3.bf16.msra.mxu0 %v2278_v57 }
  0x47   :  { %1659 = vmatprep.subr.bf16.mxu0 %v2607_v55  ;;  %1673 = vmatprep.mubr.msk.bf16.mxu0 %vm1798_vm0, %v2607_v55 }
  0x49   :  { %1466 = vmatpush3.bf16.msra.mxu1 %v1887_v6 }
  0x4a   :  { %1467 = vmatprep.subr.bf16.mxu1 %v1899_v8  ;;  %1660 = vmatpush3.bf16.msra.mxu0 %v2284_v59 }
  0x4b   :  { %1661 = vmatprep.subr.bf16.mxu0 %v2607_v55 }
  0x4d   :  { %1468 = vmatpush3.bf16.msra.mxu1 %v1911_v10 }
  0x4e   :  { %1469 = vmatprep.subr.bf16.mxu1 %v1923_v12  ;;  %1662 = vmatpush3.bf16.msra.mxu0 %v2290_v61 }
  0x4f   :  { %1663 = vmatprep.subr.bf16.mxu0 %v2607_v55 }
  0x51   :  { %1470 = vmatpush3.bf16.msra.mxu1 %v1935_v14 }
  0x52   :  { %1471 = vmatprep.subr.bf16.mxu1 %v1947_v16  ;;  %1664 = vmatpush3.bf16.msra.mxu0 %v2298_v63 }
  0x53   :  { %1665 = vmatprep.subr.bf16.mxu0 %v2607_v55 }
  0x55   :  { %1472 = vmatpush3.bf16.msra.mxu1 %v1959_v18 }
  0x56   :  { %1473 = vmatprep.subr.bf16.mxu1 %v1971_v20  ;;  %1666 = vmatpush3.bf16.msra.mxu0 %v2305_v33 }
  0x57   :  { %1667 = vmatprep.subr.bf16.mxu0 %v2607_v55 }
  0x59   :  { %1474 = vmatpush3.bf16.msra.mxu1 %v1983_v22 }
  0x5a   :  { %1475 = vmatprep.subr.bf16.mxu1 %v1995_v24  ;;  %1668 = vmatpush3.bf16.msra.mxu0 %v2313_v35 }
  0x5b   :  { %1669 = vmatprep.subr.bf16.mxu0 %v2607_v55 }
  0x5d   :  { %1476 = vmatpush3.bf16.msra.mxu1 %v2007_v26  ;;  %v840_v26 = vld [vmem:[%s2573_s1] sm:$0xff] }
  0x5e   :  { %1477 = vmatprep.subr.bf16.mxu1 %v2019_v28  ;;  %1670 = vmatpush3.bf16.msra.mxu0 %v2320_v37  ;;  %v848_v24 = vpack.c.bf16 %v840_v26, %v840_v26 }
  0x5f   :  { %1671 = vmatprep.subr.bf16.mxu0 %v2607_v55 }
  0x61   :  { %1478 = vmatpush3.bf16.msra.mxu1 %v2031_v30  ;;  %v841_v30 = vld [vmem:[%s2573_s1 + $0x8] sm:$0xff] }
  0x62   :  { %1507 = vmatprep.subr.bf16.mxu1 %v2056_v40  ;;  %v2327_v40 = vld [vmem:[%s2572_s5] sm:$0xff]   ;;  %v849_v28 = vpack.c.bf16 %v841_v30, %v841_v30 }
  0x63   :  { %2645 = vst [vmem:[#allocation29_spill] sm:$0xff] %v2327_v40  ;;  %1672 = vmatpush3.bf16.msra.mxu0 %v2327_v40 }
  0x64   :  { %1485 = vmatprep.subr.bf16.mxu0 %v1857_v1  ;;  %888 = vmatprep.mubr.bf16.mxu1 %v849_v28  ;;  %v844_v28 = vld [vmem:[%s2573_s1 + $0x20] sm:$0xff] }
  0x65   :  { %889 = vmatmul.mubr.bf16.vlgmr.msra.gmra.mxu1 %v848_v24  ;;  %v845_v24 = vld [vmem:[%s2573_s1 + $0x28] sm:$0xff]  ;;  %v852_v30 = vpack.c.bf16 %v844_v28, %v844_v28 }
  0x66   :  { %1508 = vmatpush3.bf16.msra.mxu1 %v2066_v42  ;;  %v853_v26 = vpack.c.bf16 %v845_v24, %v845_v24 }
  0x67   :  { %1509 = vmatprep.subr.bf16.mxu1 %v2079_v44 }
  0x68   :  { %968 = vmatprep.mubr.bf16.mxu1 %v853_v26 }
  0x6a   :  { %1510 = vmatpush3.bf16.msra.mxu1 %v2091_v46 }
  0x6b   :  { %1511 = vmatprep.subr.bf16.mxu1 %v2103_v48 }
  0x6e   :  { %1512 = vmatpush3.bf16.msra.mxu1 %v2115_v50 }
  0x6f   :  { %1513 = vmatprep.subr.bf16.mxu1 %v2127_v52 }
  0x72   :  { %1514 = vmatpush3.bf16.msra.mxu1 %v2139_v54 }
  0x73   :  { %1515 = vmatprep.subr.bf16.mxu1 %v2151_v56 }
  0x76   :  { %1516 = vmatpush3.bf16.msra.mxu1 %v2163_v58 }
  0x77   :  { %1517 = vmatprep.subr.bf16.mxu1 %v2175_v60  ;;  %v843_v60 = vld [vmem:[%s2573_s1 + $0x18] sm:$0xff] }
  0x7a   :  { %1518 = vmatpush3.bf16.msra.mxu1 %v2187_v62 }
  0x7b   :  { %1519 = vmatprep.subr.bf16.mxu1 %v2199_v32 }
  0x7e   :  { %1520 = vmatpush3.bf16.msra.mxu1 %v2211_v34 }
  0x7f   :  { %1521 = vmatprep.subr.bf16.mxu1 %v2223_v36 }
  0x82   :  { %1522 = vmatpush3.bf16.msra.mxu1 %v2235_v38 }
  0x83   :  { %1677 = vmatprep.subr.bf16.mxu1 %v2607_v55 }
  0x85   :  { %969 = vmatmul.mubr.bf16.vlgmr.msra.gmra.mxu1 %v852_v30 }
  0x86   :  { %1678 = vmatpush3.bf16.msra.mxu1 %v2278_v57  ;;  %1693 = vmatprep.mubr.msk.bf16.mxu1 %vm1798_vm0, %v2607_v55 }
  0x87   :  { %1679 = vmatprep.subr.bf16.mxu1 %v2607_v55 }
  0x8a   :  { %1680 = vmatpush3.bf16.msra.mxu1 %v2284_v59 }
  0x8b   :  { %1681 = vmatprep.subr.bf16.mxu1 %v2607_v55 }
  0x8e   :  { %1682 = vmatpush3.bf16.msra.mxu1 %v2290_v61 }
  0x8f   :  { %1683 = vmatprep.subr.bf16.mxu1 %v2607_v55 }
  0x92   :  { %1684 = vmatpush3.bf16.msra.mxu1 %v2298_v63 }
  0x93   :  { %1685 = vmatprep.subr.bf16.mxu1 %v2607_v55 }
  0x96   :  { %1686 = vmatpush3.bf16.msra.mxu1 %v2305_v33 }
  0x97   :  { %1687 = vmatprep.subr.bf16.mxu1 %v2607_v55 }
  0x9a   :  { %1688 = vmatpush3.bf16.msra.mxu1 %v2313_v35  ;;  %v2382_v35 = vld [vmem:[%s2574_s4] ss:$0 sm:$0xff] }
  0x9b   :  { %1689 = vmatprep.subr.bf16.mxu1 %v2607_v55 }
  0x9e   :  { %1690 = vmatpush3.bf16.msra.mxu1 %v2320_v37 }
  0x9f   :  { %1691 = vmatprep.subr.bf16.mxu1 %v2607_v55 }
  0xa2   :  { %1692 = vmatpush3.bf16.msra.mxu1 %v2327_v40 }
  0xa3   :  { %1582 = vmatprep.subr.bf16.mxu1 %v1857_v1 }
  0xe3   :  { %v1382_v24 = vpop.f32.mrf.mxu0 }
  0xe4   :  { %v1404_v26 = vpop.f32.mrf.mxu1 }
  0xe5   :  { %v1383_v28 = vpop.f32.mrf.mxu0 }
  0xe6   :  { %v1405_v30 = vpop.f32.mrf.mxu1  ;;  %v1384_v57 = vadd.f32 %v1383_v28, %v1382_v24 }
  0xe7   :  { %v1385_v63 = vpop.f32.mrf.mxu0  ;;  %v1406_v37 = vadd.f32 %v1405_v30, %v1404_v26 }
  0xe8   :  { %v1407_v33 = vpop.f32.mrf.mxu1  ;;  %v617_v55 = vadd.f32 %v1384_v57, %v2382_v35  ;;  %v851_v57 = vpack.c.bf16 %v843_v60, %v843_v60  ;;  %v2650_v60 = vld [vmem:[#allocation14_spill] sm:$0xff] }
  0xe9   :  { %v1386_v61 = vpop.f32.mrf.mxu0 }
  0xea   :  { %v1408_v59 = vpop.f32.mrf.mxu1  ;;  %v657_v36 = vadd.f32 %v1406_v37, %v617_v55 }
 0x103   :  { %v1426_v40 = vpop.f32.mrf.mxu0 }
 0x104   :  { %v1448_v38 = vpop.f32.mrf.mxu1 }
 0x105   :  { %v1427_v1 = vpop.f32.mrf.mxu0 }
 0x106   :  { %v1428_v34 = vadd.f32 %v1427_v1, %v1426_v40  ;;  %v1449_v32 = vpop.f32.mrf.mxu1  ;;  %v2648_v40 = vld [vmem:[#allocation10_spill] sm:$0xff] }
 0x107   :  { %v1429_v62 = vpop.f32.mrf.mxu0  ;;  %v1450_v33 = vadd.f32 %v1449_v32, %v1448_v38  ;;  %v2652_v32 = vld [vmem:[#allocation18_spill] sm:$0xff] }
 0x108   :  { %v697_v63 = vadd.f32 %v1428_v34, %v657_v36  ;;  %v1451_v61 = vpop.f32.mrf.mxu1  ;;  %v2651_v62 = vld [vmem:[#allocation16_spill] sm:$0xff] }
 0x109   :  { %v1430_v59 = vpop.f32.mrf.mxu0  ;;  %v846_v34 = vld [vmem:[%s2573_s1 + $0x30] sm:$0xff] }
 0x10a   :  { %v737_v24 = vadd.f32 %v1450_v33, %v697_v63  ;;  %v1452_v28 = vpop.f32.mrf.mxu1  ;;  %v2653_v36 = vld [vmem:[#allocation20_spill] sm:$0xff]  ;;  %v854_v38 = vpack.c.bf16 %v846_v34, %v846_v34  ;;  %v1060_v33 = vld [vmem:[%s2575_s2] sm:$0xff]  ;;  %v2659_v59 = vld [vmem:[#allocation9_spill] sm:$0xff] }
 0x10b   :  { %v1068_v61 = vpack.c.bf16 %v1060_v33, %v1060_v33  ;;  %v2661_v28 = vld [vmem:[#allocation13_spill] sm:$0xff]  ;;  %v2671_v34 = vld [vmem:[#allocation26_spill] sm:$0xff] }
 0x10c   :  { %v742_v58 = vmax.f32 %v737_v24, 0.0  ;;  %v2660_v24 = vld [vmem:[#allocation11_spill] sm:$0xff] }
 0x10e   :  { %v743_v26 = vpack.c.bf16 %v742_v58, %v742_v58  ;;  %v2649_v58 = vld [vmem:[#allocation12_spill] sm:$0xff] }
 0x110   :  { %1674 = vmatmul.mubr.bf16.vlgmr.msra.gmra.mxu0 %v743_v26  ;;  %v2667_v26 = vld [vmem:[#allocation22_spill] sm:$0xff] }
 0x111   :  { %1486 = vmatpush3.bf16.msra.mxu0 %v1869_v3  ;;  %928 = vmatprep.mubr.bf16.mxu0 %v851_v57  ;;  %v842_v3 = vld [vmem:[%s2573_s1 + $0x10] sm:$0xff]  ;;  %v2666_v57 = vmov 0.0  }
 0x112   :  { %1487 = vmatprep.subr.bf16.mxu0 %v1881_v5  ;;  %v847_v5 = vld [vmem:[%s2573_s1 + $0x38] sm:$0xff] }
 0x115   :  { %1488 = vmatpush3.bf16.msra.mxu0 %v1893_v7  ;;  %v850_v7 = vpack.c.bf16 %v842_v3, %v842_v3  ;;  %v2668_v3 = vld [vmem:[#allocation23_spill] sm:$0xff] }
 0x116   :  { %1489 = vmatprep.subr.bf16.mxu0 %v1905_v9  ;;  %v855_v9 = vpack.c.bf16 %v847_v5, %v847_v5  ;;  %v2669_v5 = vld [vmem:[#allocation24_spill] sm:$0xff] }
 0x119   :  { %1490 = vmatpush3.bf16.msra.mxu0 %v1917_v11  ;;  %v2646_v11 = vld [vmem:[#allocation7_spill] sm:$0xff] }
 0x11a   :  { %1491 = vmatprep.subr.bf16.mxu0 %v1929_v13  ;;  %v2647_v13 = vld [vmem:[#allocation8_spill] sm:$0xff] }
 0x11d   :  { %1492 = vmatpush3.bf16.msra.mxu0 %v1941_v15 }
 0x11e   :  { %1493 = vmatprep.subr.bf16.mxu0 %v1953_v17 }
 0x121   :  { %1494 = vmatpush3.bf16.msra.mxu0 %v1965_v19 }
 0x122   :  { %1495 = vmatprep.subr.bf16.mxu0 %v1977_v21 }
 0x125   :  { %1496 = vmatpush3.bf16.msra.mxu0 %v1989_v23  ;;  %v1479_v55 = vpop.f32.mrf.mxu1 }
 0x126   :  { %1497 = vmatprep.subr.bf16.mxu0 %v2001_v25 }
 0x127   :  { %v1480_v37 = vpop.f32.mrf.mxu1 }
 0x128   :  { %v2433_v30 = vadd.f32 %v1480_v37, %v1479_v55 }
 0x129   :  { %1498 = vmatpush3.bf16.msra.mxu0 %v2013_v27  ;;  %v1482_v1 = vpop.f32.mrf.mxu1 }
 0x12a   :  { %1499 = vmatprep.subr.bf16.mxu0 %v2025_v29 }
 0x12b   :  { %v1483_v63 = vpop.f32.mrf.mxu1 }
 0x12c   :  { %v2672_v63 = vld [vmem:[#allocation27_spill] sm:$0xff] }
 0x12d   :  { %1500 = vmatpush3.bf16.msra.mxu0 %v2037_v31 }
 0x12e   :  { %1529 = vmatprep.subr.bf16.mxu0 %v2061_v41 }
 0x130   :  { %929 = vmatmul.mubr.bf16.vlgmr.msra.gmra.mxu0 %v850_v7  ;;  %v2670_v7 = vld [vmem:[#allocation25_spill] sm:$0xff] }
 0x131   :  { %1530 = vmatpush3.bf16.msra.mxu0 %v2073_v43  ;;  %1008 = vmatprep.mubr.bf16.mxu0 %v855_v9  ;;  %v2490_v9 = vld [vmem:[%s2576_s6] ss:$0 sm:$0xff] }
 0x132   :  { %1531 = vmatprep.subr.bf16.mxu0 %v2085_v45 }
 0x135   :  { %1532 = vmatpush3.bf16.msra.mxu0 %v2097_v47 }
 0x136   :  { %1533 = vmatprep.subr.bf16.mxu0 %v2109_v49 }
 0x139   :  { %1534 = vmatpush3.bf16.msra.mxu0 %v2121_v51 }
 0x13a   :  { %1535 = vmatprep.subr.bf16.mxu0 %v2133_v53 }
 0x13d   :  { %1536 = vmatpush3.bf16.msra.mxu0 %v2646_v11 }
 0x13e   :  { %1537 = vmatprep.subr.bf16.mxu0 %v2647_v13 }
 0x141   :  { %1538 = vmatpush3.bf16.msra.mxu0 %v2648_v40 }
 0x142   :  { %1539 = vmatprep.subr.bf16.mxu0 %v2649_v58 }
 0x145   :  { %1540 = vmatpush3.bf16.msra.mxu0 %v2650_v60 }
 0x146   :  { %1541 = vmatprep.subr.bf16.mxu0 %v2651_v62 }
 0x149   :  { %1542 = vmatpush3.bf16.msra.mxu0 %v2652_v32 }
 0x14a   :  { %1543 = vmatprep.subr.bf16.mxu0 %v2653_v36 }
 0x14d   :  { %1544 = vmatpush3.bf16.msra.mxu0 %v2241_v39 }
 0x14e   :  { %1560 = vmatprep.subr.bf16.mxu0 %v1852_v0  ;;  %v2654_v0 = vld [vmem:[#allocation2_spill] sm:$0xff] }
 0x150   :  { %1009 = vmatmul.mubr.bf16.vlgmr.msra.gmra.mxu0 %v854_v38 }
 0x151   :  { %1561 = vmatpush3.bf16.msra.mxu0 %v1863_v2  ;;  %v2655_v2 = vld [vmem:[#allocation3_spill] sm:$0xff] }
 0x152   :  { %1562 = vmatprep.subr.bf16.mxu0 %v1875_v4  ;;  %v2656_v4 = vld [vmem:[#allocation4_spill] sm:$0xff] }
 0x155   :  { %1563 = vmatpush3.bf16.msra.mxu0 %v1887_v6  ;;  %v2657_v6 = vld [vmem:[#allocation5_spill] sm:$0xff] }
 0x156   :  { %1564 = vmatprep.subr.bf16.mxu0 %v1899_v8  ;;  %v2658_v8 = vld [vmem:[#allocation6_spill] sm:$0xff] }
 0x159   :  { %1565 = vmatpush3.bf16.msra.mxu0 %v1911_v10  ;;  %v1523_v10 = vpop.f32.mrf.mxu1 }
 0x15a   :  { %1566 = vmatprep.subr.bf16.mxu0 %v1923_v12 }
 0x15b   :  { %v1524_v12 = vpop.f32.mrf.mxu1 }
 0x15d   :  { %1567 = vmatpush3.bf16.msra.mxu0 %v1935_v14  ;;  %v2447_v14 = vadd.f32 %v1524_v12, %v1523_v10  ;;  %v891_v10 = vadd.f32 %v2433_v30, %v2382_v35 }
 0x15e   :  { %1568 = vmatprep.subr.bf16.mxu0 %v1947_v16  ;;  %v1526_v16 = vpop.f32.mrf.mxu1 }
 0x161   :  { %1569 = vmatpush3.bf16.msra.mxu0 %v1959_v18  ;;  %v1527_v18 = vpop.f32.mrf.mxu1 }
 0x162   :  { %1570 = vmatprep.subr.bf16.mxu0 %v1971_v20  ;;  %v1061_v20 = vld [vmem:[%s2575_s2 + $0x8] sm:$0xff] }
 0x165   :  { %1571 = vmatpush3.bf16.msra.mxu0 %v1983_v22  ;;  %v1069_v22 = vpack.c.bf16 %v1061_v20, %v1061_v20 }
 0x166   :  { %1572 = vmatprep.subr.bf16.mxu0 %v2654_v0 }
 0x167   :  { %1108 = vmatprep.mubr.bf16.mxu0 %v1069_v22 }
 0x169   :  { %1573 = vmatpush3.bf16.msra.mxu0 %v2655_v2 }
 0x16a   :  { %1574 = vmatprep.subr.bf16.mxu0 %v2656_v4  ;;  %v2673_v4 = vld [vmem:[#allocation28_spill] sm:$0xff] }
 0x16d   :  { %1575 = vmatpush3.bf16.msra.mxu0 %v2657_v6  ;;  %v2674_v6 = vld [vmem:[#allocation29_spill] sm:$0xff] }
 0x16e   :  { %1604 = vmatprep.subr.bf16.mxu0 %v2658_v8 }
 0x170   :  { %1109 = vmatmul.mubr.bf16.vlgmr.msra.gmra.mxu0 %v1068_v61 }
 0x171   :  { %1605 = vmatpush3.bf16.msra.mxu0 %v2066_v42  ;;  %v2662_v42 = vld [vmem:[#allocation15_spill] sm:$0xff] }
 0x172   :  { %1606 = vmatprep.subr.bf16.mxu0 %v2079_v44  ;;  %v2663_v44 = vld [vmem:[#allocation17_spill] sm:$0xff] }
 0x175   :  { %1607 = vmatpush3.bf16.msra.mxu0 %v2091_v46  ;;  %v2664_v46 = vld [vmem:[#allocation19_spill] sm:$0xff] }
 0x176   :  { %1608 = vmatprep.subr.bf16.mxu0 %v2103_v48  ;;  %v1065_v48 = vld [vmem:[%s2575_s2 + $0x28] sm:$0xff] }
 0x179   :  { %1609 = vmatpush3.bf16.msra.mxu0 %v2115_v50  ;;  %v1073_v50 = vpack.c.bf16 %v1065_v48, %v1065_v48 }
 0x17a   :  { %1610 = vmatprep.subr.bf16.mxu0 %v2127_v52  ;;  %v1064_v52 = vld [vmem:[%s2575_s2 + $0x20] sm:$0xff] }
 0x17b   :  { %1188 = vmatprep.mubr.bf16.mxu0 %v1073_v50 }
 0x17d   :  { %1611 = vmatpush3.bf16.msra.mxu0 %v2139_v54  ;;  %v2665_v54 = vld [vmem:[#allocation21_spill] sm:$0xff] }
 0x17e   :  { %1612 = vmatprep.subr.bf16.mxu0 %v2151_v56  ;;  %v1072_v56 = vpack.c.bf16 %v1064_v52, %v1064_v52  ;;  %v1791_v52 = vld [vmem:[%s2570_s3 + $0xb8] sm:$0xff]  }
 0x181   :  { %1613 = vmatpush3.bf16.msra.mxu0 %v2659_v59 }
 0x182   :  { %1614 = vmatprep.subr.bf16.mxu0 %v2660_v24 }
 0x185   :  { %1615 = vmatpush3.bf16.msra.mxu0 %v2661_v28 }
 0x186   :  { %1616 = vmatprep.subr.bf16.mxu0 %v2662_v42 }
 0x189   :  { %1617 = vmatpush3.bf16.msra.mxu0 %v2663_v44  ;;  %v1063_v44 = vld [vmem:[%s2575_s2 + $0x18] sm:$0xff] }
 0x18a   :  { %1618 = vmatprep.subr.bf16.mxu0 %v2664_v46  ;;  %v1071_v50 = vpack.c.bf16 %v1063_v44, %v1063_v44 }
 0x18d   :  { %1619 = vmatpush3.bf16.msra.mxu0 %v2665_v54  ;;  %v1793_v54 = vld [vmem:[%s2570_s3 + $0xb0] sm:$0xff]  }
 0x18e   :  { %1697 = vmatprep.subr.bf16.mxu0 %v2666_v57 }
 0x190   :  { %1189 = vmatmul.mubr.bf16.vlgmr.msra.gmra.mxu0 %v1072_v56  ;;  %v1794_v56 = vld [vmem:[%s2570_s3 + $0xe8] sm:$0xff]  }
 0x191   :  { %1698 = vmatpush3.bf16.msra.mxu0 %v2667_v26  ;;  %1713 = vmatprep.mubr.msk.bf16.mxu0 %vm1798_vm0, %v2666_v57  ;;  %v1796_v26 = vld [vmem:[%s2570_s3 + $0xe0] sm:$0xff]  }
 0x192   :  { %1699 = vmatprep.subr.bf16.mxu0 %v2666_v57 }
 0x195   :  { %1700 = vmatpush3.bf16.msra.mxu0 %v2668_v3  ;;  %v1062_v3 = vld [vmem:[%s2575_s2 + $0x10] sm:$0xff] }
 0x196   :  { %1701 = vmatprep.subr.bf16.mxu0 %v2666_v57 }
 0x199   :  { %1702 = vmatpush3.bf16.msra.mxu0 %v2669_v5 }
 0x19a   :  { %1703 = vmatprep.subr.bf16.mxu0 %v2666_v57 }
 0x19d   :  { %1704 = vmatpush3.bf16.msra.mxu0 %v2670_v7 }
 0x19e   :  { %1705 = vmatprep.subr.bf16.mxu0 %v2666_v57 }
 0x1a1   :  { %1706 = vmatpush3.bf16.msra.mxu0 %v2671_v34 }
 0x1a2   :  { %1707 = vmatprep.subr.bf16.mxu0 %v2666_v57 }
 0x1a5   :  { %1708 = vmatpush3.bf16.msra.mxu0 %v2672_v63 }
 0x1a6   :  { %1709 = vmatprep.subr.bf16.mxu0 %v2666_v57 }
 0x1a9   :  { %1710 = vmatpush3.bf16.msra.mxu0 %v2673_v4 }
 0x1aa   :  { %1711 = vmatprep.subr.bf16.mxu0 %v2666_v57  ;;  %v1795_v57 = vld [vmem:[%s2570_s3 + $0xa8] sm:$0xff]  }
 0x1ad   :  { %1712 = vmatpush3.bf16.msra.mxu0 %v2674_v6 }
 0x1d0   :  { %v832_v38 = vpop.f32.mrf.mxu0 }
 0x1d1   :  { %v833_v55 = vadd.f32 %v2490_v9, %v832_v38 }
 0x1d2   :  { %v1675_v37 = vpop.f32.mrf.mxu0 }
 0x1d3   :  { %v838_v1 = vpack.c.bf16 %v833_v55, %v833_v55 }
 0x1d4   :  { %v835_v0 = vpop.f32.mrf.mxu0 }
 0x1d5   :  { %839 = vst [vmem:[%s2577_s7] sm:$0xf] %v838_v1 }
 0x1d6   :  { %v1676_v2 = vpop.f32.mrf.mxu0 }
 0x1f0   :  { %v1501_v8 = vpop.f32.mrf.mxu0 }
 0x1f2   :  { %v1502_v12 = vpop.f32.mrf.mxu0 }
 0x1f3   :  { %v1503_v16 = vadd.f32 %v1502_v12, %v1501_v8 }
 0x1f4   :  { %v1504_v18 = vpop.f32.mrf.mxu0 }
 0x1f5   :  { %v931_v20 = vadd.f32 %v1503_v16, %v891_v10 }
 0x1f6   :  { %v1505_v22 = vpop.f32.mrf.mxu0 }
 0x1f7   :  { %v971_v33 = vadd.f32 %v2447_v14, %v931_v20  ;;  %v1792_v14 = vld [vmem:[%s2570_s3 + $0xf0] sm:$0xff]  }
 0x210   :  { %v1545_v61 = vpop.f32.mrf.mxu0 }
 0x212   :  { %v1546_v59 = vpop.f32.mrf.mxu0 }
 0x213   :  { %v1547_v24 = vadd.f32 %v1546_v59, %v1545_v61 }
 0x214   :  { %v1548_v28 = vpop.f32.mrf.mxu0 }
 0x215   :  { %v1011_v42 = vadd.f32 %v1547_v24, %v971_v33 }
 0x216   :  { %v1549_v46 = vpop.f32.mrf.mxu0 }
 0x217   :  { %v1016_v48 = vmax.f32 %v1011_v42, 0.0 }
 0x219   :  { %v1017_v30 = vpack.c.bf16 %v1016_v48, %v1016_v48 }
 0x21b   :  { %1694 = vmatmul.mubr.bf16.vlgmr.msra.gmra.mxu1 %v1017_v30 }
 0x21c   :  { %1583 = vmatpush3.bf16.msra.mxu1 %v1791_v52  ;;  %1148 = vmatprep.mubr.bf16.mxu1 %v1071_v50 }
 0x21d   :  { %1584 = vmatprep.subr.bf16.mxu1 %v1792_v14 }
 0x220   :  { %1585 = vmatpush3.bf16.msra.mxu1 %v1793_v54 }
 0x221   :  { %1586 = vmatprep.subr.bf16.mxu1 %v1794_v56 }
 0x224   :  { %1587 = vmatpush3.bf16.msra.mxu1 %v1795_v57 }
 0x225   :  { %1588 = vmatprep.subr.bf16.mxu1 %v1796_v26 }
 0x228   :  { %1589 = vmatpush3.bf16.msra.mxu1 %v1941_v15  ;;  %v1067_v15 = vld [vmem:[%s2575_s2 + $0x38] sm:$0xff] }
 0x229   :  { %1590 = vmatprep.subr.bf16.mxu1 %v1953_v17  ;;  %v1070_v17 = vpack.c.bf16 %v1062_v3, %v1062_v3 }
 0x22c   :  { %1591 = vmatpush3.bf16.msra.mxu1 %v1965_v19  ;;  %v1075_v19 = vpack.c.bf16 %v1067_v15, %v1067_v15 }
 0x22d   :  { %1592 = vmatprep.subr.bf16.mxu1 %v1977_v21  ;;  %v1066_v21 = vld [vmem:[%s2575_s2 + $0x30] sm:$0xff] }
 0x230   :  { %1593 = vmatpush3.bf16.msra.mxu1 %v1989_v23  ;;  %v1074_v23 = vpack.c.bf16 %v1066_v21, %v1066_v21 }
 0x231   :  { %1594 = vmatprep.subr.bf16.mxu1 %v2001_v25  ;;  %v1576_v25 = vpop.f32.mrf.mxu0 }
 0x234   :  { %1595 = vmatpush3.bf16.msra.mxu1 %v2013_v27  ;;  %v1577_v27 = vpop.f32.mrf.mxu0 }
 0x235   :  { %1596 = vmatprep.subr.bf16.mxu1 %v2025_v29  ;;  %v1578_v29 = vadd.f32 %v1577_v27, %v1576_v25 }
 0x238   :  { %1597 = vmatpush3.bf16.msra.mxu1 %v2037_v31  ;;  %v1579_v31 = vpop.f32.mrf.mxu0 }
 0x239   :  { %1626 = vmatprep.subr.bf16.mxu1 %v2061_v41 }
 0x23a   :  { %v1580_v41 = vpop.f32.mrf.mxu0 }
 0x23b   :  { %1149 = vmatmul.mubr.bf16.vlgmr.msra.gmra.mxu1 %v1070_v17 }
 0x23c   :  { %1627 = vmatpush3.bf16.msra.mxu1 %v2073_v43  ;;  %1228 = vmatprep.mubr.bf16.mxu1 %v1075_v19 }
 0x23d   :  { %1628 = vmatprep.subr.bf16.mxu1 %v2085_v45 }
 0x240   :  { %1629 = vmatpush3.bf16.msra.mxu1 %v2097_v47 }
 0x241   :  { %1630 = vmatprep.subr.bf16.mxu1 %v2109_v49 }
 0x244   :  { %1631 = vmatpush3.bf16.msra.mxu1 %v2121_v51 }
 0x245   :  { %1632 = vmatprep.subr.bf16.mxu1 %v2133_v53 }
 0x248   :  { %1633 = vmatpush3.bf16.msra.mxu1 %v2646_v11 }
 0x249   :  { %1634 = vmatprep.subr.bf16.mxu1 %v2647_v13 }
 0x24c   :  { %1635 = vmatpush3.bf16.msra.mxu1 %v2648_v40 }
 0x24d   :  { %1636 = vmatprep.subr.bf16.mxu1 %v2649_v58 }
 0x250   :  { %1637 = vmatpush3.bf16.msra.mxu1 %v2650_v60  ;;  %v1620_v43 = vpop.f32.mrf.mxu0 }
 0x251   :  { %1638 = vmatprep.subr.bf16.mxu1 %v2651_v62  ;;  %v1111_v62 = vadd.f32 %v1578_v29, %v2382_v35 }
 0x252   :  { %v1621_v45 = vpop.f32.mrf.mxu0 }
 0x253   :  { %v1622_v47 = vadd.f32 %v1621_v45, %v1620_v43 }
 0x254   :  { %1639 = vmatpush3.bf16.msra.mxu1 %v2652_v32  ;;  %v1623_v49 = vpop.f32.mrf.mxu0 }
 0x255   :  { %1640 = vmatprep.subr.bf16.mxu1 %v2653_v36 }
 0x256   :  { %v1624_v51 = vpop.f32.mrf.mxu0 }
 0x258   :  { %1641 = vmatpush3.bf16.msra.mxu1 %v2241_v39 }
 0x25b   :  { %1229 = vmatmul.mubr.bf16.vlgmr.msra.gmra.mxu1 %v1074_v23 }
 0x2db   :  { %v1052_v53 = vpop.f32.mrf.mxu1 }
 0x2dc   :  { %v1053_v11 = vadd.f32 %v2490_v9, %v1052_v53 }
 0x2dd   :  { %v1695_v13 = vpop.f32.mrf.mxu1 }
 0x2de   :  { %v1058_v40 = vpack.c.bf16 %v1053_v11, %v1053_v11 }
 0x2df   :  { %v1055_v58 = vpop.f32.mrf.mxu1 }
 0x2e0   :  { %1059 = vst [vmem:[%s2578_s8] sm:$0xf] %v1058_v40 }
 0x2e1   :  { %v1696_v39 = vpop.f32.mrf.mxu1 }
 0x2fb   :  { %v1598_v60 = vpop.f32.mrf.mxu1 }
 0x2fd   :  { %v1599_v32 = vpop.f32.mrf.mxu1 }
 0x2fe   :  { %v1600_v36 = vadd.f32 %v1599_v32, %v1598_v60 }
 0x2ff   :  { %v1601_v5 = vpop.f32.mrf.mxu1 }
 0x300   :  { %v1151_v7 = vadd.f32 %v1600_v36, %v1111_v62 }
 0x301   :  { %v1602_v34 = vpop.f32.mrf.mxu1 }
 0x302   :  { %v1191_v38 = vadd.f32 %v1622_v47, %v1151_v7 }
 0x31b   :  { %v1642_v55 = vpop.f32.mrf.mxu1 }
 0x31d   :  { %v1643_v37 = vpop.f32.mrf.mxu1 }
 0x31e   :  { %v1644_v1 = vadd.f32 %v1643_v37, %v1642_v55 }
 0x31f   :  { %v1645_v63 = vpop.f32.mrf.mxu1 }
 0x320   :  { %v1231_v0 = vadd.f32 %v1644_v1, %v1191_v38 }
 0x321   :  { %v1646_v2 = vpop.f32.mrf.mxu1 }
 0x322   :  { %v1236_v4 = vmax.f32 %v1231_v0, 0.0 }
 0x324   :  { %v1237_v6 = vpack.c.bf16 %v1236_v4, %v1236_v4 }
 0x326   :  { %1714 = vmatmul.mubr.bf16.vlgmr.msra.gmra.mxu0 %v1237_v6 }
 0x3e6   :  { %v1272_v8 = vpop.f32.mrf.mxu0 }
 0x3e7   :  { %v1273_v10 = vadd.f32 %v2490_v9, %v1272_v8 }
 0x3e8   :  { %v1715_v12 = vpop.f32.mrf.mxu0 }
 0x3e9   :  { %v1278_v35 = vpack.c.bf16 %v1273_v10, %v1273_v10 }
 0x3ea   :  { %v1275_v16 = vpop.f32.mrf.mxu0 }
 0x3eb   :  { %1279 = vst [vmem:[%s2579_s9] sm:$0xf] %v1278_v35 }
 0x3ec   :  { %v1716_v18 = vpop.f32.mrf.mxu0 }

</bundles_post_ra>
